<compile_context>
chip_gen: v5e
topology: v5e:2x2
jax: 0.10.0
libtpu: 0.0.40
codegen_flags: <defaults>
</compile_context>

<pallas_src>
import functools

import jax
import jax.numpy as jnp
from jax.experimental import pallas as pl
from jax.experimental.pallas import tpu as pltpu


def _round_up(x, m):
    return ((x + m - 1) // m) * m


def _maxpool_kernel(x_ref, o_ref, *, k, new_h, new_w):
    # x_ref: (TB, rows_blk, W) block of planes (native dtype)
    # o_ref: (TB, new_h, new_w) float32
    acc = x_ref[:, 0:new_h, 0:new_w]
    for i in range(k):
        for j in range(k):
            if i == 0 and j == 0:
                continue
            acc = jnp.maximum(acc, x_ref[:, i:i + new_h, j:j + new_w])
    o_ref[...] = acc.astype(o_ref.dtype)


def _pick_plane_tile(n, plane_in_bytes, plane_out_bytes,
                     target_block_bytes=4 << 20):
    """Largest divisor of n whose input block stays near ~4 MiB.

    ~4 MiB input block + output block, double-buffered, is ~10 MiB worst
    case -> fits comfortably under every generation's scoped-VMEM budget
    while sitting past the per-grid-step-overhead knee (>=512 KiB tiles).
    Using a divisor keeps every block exactly in bounds (no ragged edge).
    """
    per_plane = max(plane_in_bytes + plane_out_bytes, 1)
    cap = max(1, min(n, target_block_bytes // per_plane))
    for tb in range(cap, 0, -1):
        if n % tb == 0:
            return tb
    return 1


def max_pool(x, kernel_size):
    """Pallas equivalent of the custom MaxPool.forward (NCHW in, f32 out)."""
    if x.ndim != 4:
        raise Exception("Batch should be 4 dimensional")
    b, c, h, w = x.shape
    if h != w:
        raise Exception("Only processing square Image")
    if h % kernel_size != 0:
        raise Exception("Kernal cannot be moved completely, change Kernal size")
    k = int(kernel_size)
    new_h = int((h - k) / k + 1)
    new_w = int((w - k) / k + 1)

    n = b * c
    # Flatten (B, C) -> one leading axis; pure reshape, no copy.
    x_flat = x.reshape(n, h, w)

    # Only rows [0, new_h + k - 1) are read; trim the DMA'd block to a
    # sublane-aligned row count (must be a multiple of 8 or the full dim).
    rows_needed = new_h + k - 1
    rows_blk = min(_round_up(rows_needed, 8), h)
    if rows_blk != h and rows_blk % 8 != 0:   # only possible if h < 8
        rows_blk = h

    itemsize = jnp.dtype(x.dtype).itemsize
    plane_in_bytes = rows_blk * w * itemsize
    plane_out_bytes = new_h * new_w * 4
    tb = _pick_plane_tile(n, plane_in_bytes, plane_out_bytes)

    kernel = functools.partial(_maxpool_kernel, k=k, new_h=new_h, new_w=new_w)

    out_flat = pl.pallas_call(
        kernel,
        out_shape=jax.ShapeDtypeStruct((n, new_h, new_w), jnp.float32),
        grid_spec=pltpu.PrefetchScalarGridSpec(
            num_scalar_prefetch=0,
            grid=(n // tb,),
            in_specs=[pl.BlockSpec((tb, rows_blk, w), lambda i: (i, 0, 0))],
            out_specs=pl.BlockSpec((tb, new_h, new_w), lambda i: (i, 0, 0)),
        ),
        compiler_params=pltpu.CompilerParams(
            dimension_semantics=("parallel",),
            vmem_limit_bytes=32 << 20,
        ),
    )(x_flat)

    # torch.zeros(...) default dtype => float32 output, matching reference.
    return out_flat.reshape(b, c, new_h, new_w)


def _reference(x, kernel_size):
    """Pure-JAX reference matching the PyTorch loop semantics exactly."""
    b, c, h, w = x.shape
    new_h = h // kernel_size
    new_w = w // kernel_size
    out = jnp.zeros((b, c, new_h, new_w), jnp.float32)
    for hh in range(new_h):
        for ww in range(new_w):
            win = x[:, :, hh:hh + kernel_size, ww:ww + kernel_size]
            out = out.at[:, :, hh, ww].set(win.max(axis=(2, 3)).astype(jnp.float32))
    return out


if __name__ == "__main__":
    key = jax.random.PRNGKey(0)
    B, C, H, W = 2, 4, 16, 16
    kernel_size = 2

    x = jax.random.normal(key, (B, C, H, W), dtype=jnp.float32)

    out = max_pool(x, kernel_size)
    out = jax.block_until_ready(out)

    ref = _reference(x, kernel_size)
    assert out.shape == (B, C, H // kernel_size, W // kernel_size)
    assert out.dtype == jnp.float32
    assert jnp.allclose(out, ref), "Pallas output mismatch vs reference"

    print("KERNEL_OK")
</pallas_src>

<mosaic_0001>
module attributes {stable_mosaic.version = 11 : i64} {
  func.func @_maxpool_kernel(%arg0: i32, %arg1: memref<8x16x16xf32, #tpu.memory_space<vmem>>, %arg2: memref<8x8x8xf32, #tpu.memory_space<vmem>>) attributes {dimension_semantics = [#tpu.dimension_semantics<parallel>], iteration_bounds = array<i64: 1>, scalar_prefetch = 0 : i64, scratch_operands = 0 : i64, tpu.core_type = #tpu.core_type<tc>, window_params = [{transform_indices = @transform_0, window_bounds = array<i64: 8, 16, 16>}, {transform_indices = @transform_1, window_bounds = array<i64: 8, 8, 8>}]} {
    %c0 = arith.constant 0 : index
    %c0_0 = arith.constant 0 : index
    %c0_1 = arith.constant 0 : index
    %0 = vector.load %arg1[%c0, %c0_0, %c0_1] : memref<8x16x16xf32, #tpu.memory_space<vmem>>, vector<8x8x8xf32>
    %c0_2 = arith.constant 0 : index
    %c0_3 = arith.constant 0 : index
    %c1 = arith.constant 1 : index
    %1 = vector.load %arg1[%c0_2, %c0_3, %c1] : memref<8x16x16xf32, #tpu.memory_space<vmem>>, vector<8x8x8xf32>
    %2 = arith.maximumf %0, %1 : vector<8x8x8xf32>
    %c0_4 = arith.constant 0 : index
    %c1_5 = arith.constant 1 : index
    %c0_6 = arith.constant 0 : index
    %3 = vector.load %arg1[%c0_4, %c1_5, %c0_6] : memref<8x16x16xf32, #tpu.memory_space<vmem>>, vector<8x8x8xf32>
    %4 = arith.maximumf %2, %3 : vector<8x8x8xf32>
    %c0_7 = arith.constant 0 : index
    %c1_8 = arith.constant 1 : index
    %c1_9 = arith.constant 1 : index
    %5 = vector.load %arg1[%c0_7, %c1_8, %c1_9] : memref<8x16x16xf32, #tpu.memory_space<vmem>>, vector<8x8x8xf32>
    %6 = arith.maximumf %4, %5 : vector<8x8x8xf32>
    %c0_10 = arith.constant 0 : index
    %c0_11 = arith.constant 0 : index
    %c0_12 = arith.constant 0 : index
    %7 = vector.load %arg2[%c0_10, %c0_11, %c0_12] : memref<8x8x8xf32, #tpu.memory_space<vmem>>, vector<8x8x8xf32>
    tpu.vector_store %arg2[%c0_10, %c0_11, %c0_12], %6 {strides = array<i32>} : memref<8x8x8xf32, #tpu.memory_space<vmem>>, vector<8x8x8xf32>,
    return
  }
  func.func @transform_0(%arg0: i32) -> (i32, i32, i32) {
    %c0_i32 = arith.constant 0 : i32
    %c0_i32_0 = arith.constant 0 : i32
    %c0_i32_1 = arith.constant 0 : i32
    return %arg0, %c0_i32, %c0_i32_0 : i32, i32, i32
  }
  func.func @transform_1(%arg0: i32) -> (i32, i32, i32) {
    %c0_i32 = arith.constant 0 : i32
    %c0_i32_0 = arith.constant 0 : i32
    %c0_i32_1 = arith.constant 0 : i32
    return %arg0, %c0_i32, %c0_i32_0 : i32, i32, i32
  }
}

</mosaic_0001>

<bundles_post_ra>
// kernel: tpu_custom_call.1
= control target key start
LH: loop header
LB: loop body
LE: loop exit
PB: predicated region body
PF: predicated region fallthrough
CT: control target
= control target key end

     0   :  { %6 = vsyncpa [#allocation3], 0  ;;  %s257_s0 = inlined_call_operand.hbm [shape: f32[8,16,16], index: 0, kind: input, shape index: {}]   ;;  %s258_s1 = inlined_call_operand.hbm [shape: f32[8,8,8], index: 1, kind: output, shape index: {}]  }
   0x1   :  { %7 = vsyncpa [#allocation4], 0  ;;  %s12_s8 = sshll.u32 %s257_s0, 4  ;;  %s214_s9 = smov [#allocation2]   ;;  %s13_s8 = int_to_ptr.hbm [resolvable:$true] %s12_s8 }
   0x2   :  { %s14_s10 = sshll.u32 %s214_s9, 4  ;;  %s215_s11 = smov 128   ;;  %s15_s10 = int_to_ptr.vmem [resolvable:$true] %s14_s10 }
   0x3   :  { %s216_s12 = smov 8  }
   0x4   :  { %20 = dma.hbm_to_vmem [thread:$0]  %s13_s8, 2048, %s15_s10, [#allocation3], %s215_s11, %s215_s11, %s216_s12  }
   0x5   :  { %210 = dma.done.wait [#allocation3], 2048  }
   0x6   :  { %211 = vsyncadd [#allocation3], 4294965248  ;;  %v27_v0 = vld [vmem:[#allocation2 + $0x20] sm:$0xff]  ;;  %s217_s13 = smov 127   ;;  %v28_v3 = vld [vmem:[#allocation2 + $0x30] sm:$0xff]  ;;  %vm129_vm0 = vcmask 64512  }
   0x7   :  { %v25_v1 = vld [vmem:[#allocation2] sm:$0xff]  ;;  %45 = vrot.lane.b32.xlu1 %v27_v0, %s217_s13  ;;  %v26_v4 = vld [vmem:[#allocation2 + $0x10] sm:$0xff]  ;;  %s218_s0 = smov [#allocation5]   ;;  %s144_s17 = sshll.u32 %s258_s1, 4  ;;  %s145_s17 = int_to_ptr.hbm [resolvable:$true] %s144_s17 }
   0x8   :  { %41 = vrot.lane.b32.xlu0 %v25_v1, %s217_s13  ;;  %v235_v2 = vld [vmem:[#allocation2 + $0x40] sm:$0xff]  ;;  %v30_v5 = vld [vmem:[#allocation2 + $0x50] sm:$0xff]  ;;  %s142_s14 = sshll.u32 %s218_s0, 4  ;;  %s143_s14 = int_to_ptr.vmem [resolvable:$true] %s142_s14 }
   0x9   :  { %49 = vrot.lane.b32.xlu2 %v235_v2, %s217_s13  ;;  %v238_v6 = vld [vmem:[#allocation2 + $0x70] sm:$0xff]  ;;  %v31_v7 = vld [vmem:[#allocation2 + $0x60] sm:$0xff] }
   0xa   :  { %v73_v8 = vld [vmem:[#allocation2 + $0x1] sm:$0xff]  ;;  %v74_v10 = vld [vmem:[#allocation2 + $0x11] sm:$0xff] }
   0xb   :  { %v75_v9 = vld [vmem:[#allocation2 + $0x21] sm:$0xff]  ;;  %v76_v11 = vld [vmem:[#allocation2 + $0x31] sm:$0xff] }
   0xc   :  { %v78_v12 = vld [vmem:[#allocation2 + $0x51] sm:$0xff]  ;;  %v77_v13 = vld [vmem:[#allocation2 + $0x41] sm:$0xff] }
   0xd   :  { %v79_v14 = vld [vmem:[#allocation2 + $0x61] sm:$0xff]  ;;  %v80_v15 = vld [vmem:[#allocation2 + $0x71] sm:$0xff] }
   0xf   :  { %47 = vrot.lane.b32.xlu1 %v28_v3, %s217_s13 }
  0x10   :  { %43 = vrot.lane.b32.xlu0 %v26_v4, %s217_s13 }
  0x11   :  { %51 = vrot.lane.b32.xlu2 %v30_v5, %s217_s13 }
  0x17   :  { %55 = vrot.lane.b32.xlu1 %v238_v6, %s217_s13 }
  0x18   :  { %53 = vrot.lane.b32.xlu0 %v31_v7, %s217_s13 }
  0x19   :  { %97 = vrot.lane.b32.xlu2 %v73_v8, %s217_s13 }
  0x1f   :  { %101 = vrot.lane.b32.xlu1 %v75_v9, %s217_s13 }
  0x20   :  { %99 = vrot.lane.b32.xlu0 %v74_v10, %s217_s13 }
  0x21   :  { %103 = vrot.lane.b32.xlu2 %v76_v11, %s217_s13 }
  0x27   :  { %107 = vrot.lane.b32.xlu1 %v78_v12, %s217_s13 }
  0x28   :  { %105 = vrot.lane.b32.xlu0 %v77_v13, %s217_s13 }
  0x29   :  { %109 = vrot.lane.b32.xlu2 %v79_v14, %s217_s13 }
  0x30   :  { %111 = vrot.lane.b32.xlu0 %v80_v15, %s217_s13 }
  0x63   :  { %v50_v16 = vpop.permute.xlu2 %49 }
  0x64   :  { %v69_v44 = vmax.f32 %v235_v2, %v50_v16 }
  0x66   :  { %v85_v47 = vmax.f32 %v69_v44, %v77_v13 }
  0x6b   :  { %v52_v17 = vpop.permute.xlu2 %51 }
  0x6c   :  { %v70_v45 = vmax.f32 %v30_v5, %v52_v17 }
  0x6e   :  { %v86_v46 = vmax.f32 %v70_v45, %v78_v12 }
  0x73   :  { %v98_v18 = vpop.permute.xlu2 %97 }
  0x79   :  { %v46_v19 = vpop.permute.xlu1 %45 }
  0x7a   :  { %v42_v20 = vpop.permute.xlu0 %41  ;;  %v67_v34 = vmax.f32 %v27_v0, %v46_v19 }
  0x7b   :  { %v65_v21 = vmax.f32 %v25_v1, %v42_v20  ;;  %v104_v24 = vpop.permute.xlu2 %103 }
  0x7c   :  { %v83_v38 = vmax.f32 %v67_v34, %v75_v9 }
  0x7d   :  { %v81_v22 = vmax.f32 %v65_v21, %v73_v8 }
  0x7f   :  { %v121_v23 = vmax.f32 %v81_v22, %v98_v18 }
  0x81   :  { %130 = vst.msk [vmem:[#allocation5] sm:$0xff] %vm129_vm0, %v121_v23  ;;  %v48_v25 = vpop.permute.xlu1 %47 }
  0x82   :  { %v44_v26 = vpop.permute.xlu0 %43  ;;  %v68_v27 = vmax.f32 %v28_v3, %v48_v25 }
  0x83   :  { %v110_v33 = vpop.permute.xlu2 %109  ;;  %v66_v35 = vmax.f32 %v26_v4, %v44_v26 }
  0x84   :  { %v84_v28 = vmax.f32 %v68_v27, %v76_v11 }
  0x85   :  { %v82_v39 = vmax.f32 %v66_v35, %v74_v10 }
  0x86   :  { %v124_v29 = vmax.f32 %v84_v28, %v104_v24 }
  0x88   :  { %133 = vst.msk [vmem:[#allocation5 + $0x18] sm:$0xff] %vm129_vm0, %v124_v29 }
  0x89   :  { %v56_v30 = vpop.permute.xlu1 %55 }
  0x8a   :  { %v54_v31 = vpop.permute.xlu0 %53  ;;  %v72_v52 = vmax.f32 %v238_v6, %v56_v30 }
  0x8b   :  { %v71_v32 = vmax.f32 %v31_v7, %v54_v31 }
  0x8c   :  { %v88_v53 = vmax.f32 %v72_v52, %v80_v15 }
  0x8d   :  { %v87_v36 = vmax.f32 %v71_v32, %v79_v14 }
  0x8f   :  { %v127_v37 = vmax.f32 %v87_v36, %v110_v33 }
  0x91   :  { %136 = vst.msk [vmem:[#allocation5 + $0x30] sm:$0xff] %vm129_vm0, %v127_v37  ;;  %v102_v40 = vpop.permute.xlu1 %101 }
  0x92   :  { %v100_v41 = vpop.permute.xlu0 %99  ;;  %v123_v42 = vmax.f32 %v83_v38, %v102_v40 }
  0x93   :  { %v122_v43 = vmax.f32 %v82_v39, %v100_v41 }
  0x94   :  { %132 = vst.msk [vmem:[#allocation5 + $0x10] sm:$0xff] %vm129_vm0, %v123_v42 }
  0x95   :  { %131 = vst.msk [vmem:[#allocation5 + $0x8] sm:$0xff] %vm129_vm0, %v122_v43 }
  0x99   :  { %v108_v48 = vpop.permute.xlu1 %107 }
  0x9a   :  { %v106_v49 = vpop.permute.xlu0 %105  ;;  %v126_v50 = vmax.f32 %v86_v46, %v108_v48 }
  0x9b   :  { %v125_v51 = vmax.f32 %v85_v47, %v106_v49 }
  0x9c   :  { %135 = vst.msk [vmem:[#allocation5 + $0x28] sm:$0xff] %vm129_vm0, %v126_v50 }
  0x9d   :  { %134 = vst.msk [vmem:[#allocation5 + $0x20] sm:$0xff] %vm129_vm0, %v125_v51 }
  0xa2   :  { %v112_v54 = vpop.permute.xlu0 %111 }
  0xa3   :  { %v128_v55 = vmax.f32 %v88_v53, %v112_v54 }
  0xa5   :  { %137 = vst.msk [vmem:[#allocation5 + $0x38] sm:$0xff] %vm129_vm0, %v128_v55 }
  0xa6   :  { %150 = dma.vmem_to_hbm [thread:$0]  %s143_s14, 1024, %s145_s17, [#allocation4], %s215_s11, %s215_s11, %s216_s12  }
  0xa7   :  { %212 = dma.done.wait [#allocation4], 1024  }
  0xa8   :  { %213 = vsyncadd [#allocation4], 4294966272 }
  0xa9   :  { %155 = vsyncpa [#allocation3], 1 }
  0xaa   :  { %156 = vsyncpa [#allocation4], 1 }

</bundles_post_ra>
